<compile_context>
chip_gen: v7x
topology: tpu7x:2x2x1
jax: 0.10.0
libtpu: 0.0.40
codegen_flags: <defaults>
</compile_context>

<pallas_src>
import functools

import jax
import jax.numpy as jnp
from jax import lax
from jax.experimental import pallas as pl
from jax.experimental.pallas import tpu as pltpu

ALPHA = 4          # SlowFast alpha (temporal stride of the fuse conv)
KT = 5             # temporal kernel size
PAD_T = 2          # temporal padding
BN_EPS = 1e-5


def _conv_bnstat_kernel(x_ref, w_ref, o_ref, sum_ref, ssq_ref, *,
                        kt, c_in, c_out, hw, alpha, t_out):
    """Time-strided (KT,1,1) conv + fused BN statistics for one batch element.

    x_ref:   (1, T_pad, C_in, HW)   zero-padded time axis
    w_ref:   (C_out, KT*C_in)       weight flattened in (k, c_in) order
    o_ref:   (1, C_out, T_out*HW)   lane-dense conv output
    sum_ref: (1, C_out, 1)          per-channel sum over (T_out, HW)
    ssq_ref: (1, C_out, 1)          per-channel sum of squares
    """
    w = w_ref[...]
    s = jnp.zeros((c_out, 1), jnp.float32)
    ss = jnp.zeros((c_out, 1), jnp.float32)
    for t in range(t_out):                       # static unroll
        t0 = t * alpha
        # (KT, C_in, HW) -> (KT*C_in, HW): relayout-free since C_in % 8 == 0.
        patch = x_ref[0, t0:t0 + kt, :, :].reshape(kt * c_in, hw)
        res = jnp.dot(w, patch, preferred_element_type=jnp.float32)
        o_ref[0, :, t * hw:(t + 1) * hw] = res
        s = s + jnp.sum(res, axis=-1, keepdims=True)
        ss = ss + jnp.sum(res * res, axis=-1, keepdims=True)
    sum_ref[0, :, :] = s
    ssq_ref[0, :, :] = ss


def _bn_relu_kernel(y_ref, scale_ref, shift_ref, o_ref):
    """Per-channel folded-BN affine + ReLU on a lane-dense block."""
    y = y_ref[0, :, :]                           # (C_out, T_out*HW)
    o_ref[0, :, :] = jnp.maximum(y * scale_ref[...] + shift_ref[...], 0.0)


def fuse_forward(x_slow, x_fast, conv_w, bn_gamma, bn_beta):
    """Equivalent of Fuse.forward([x_slow, x_fast]) -> [x_slow_cat, x_fast]."""
    n, c_in, t_fast, h, w = x_fast.shape
    hw = h * w
    c_out = conv_w.shape[0]
    t_out = t_fast // ALPHA
    t_pad = t_fast + 2 * PAD_T

    # NCTHW -> (N, T_pad, C_in, HW) (one fused XLA transpose+pad pass).
    # TODO(synk): fold this permute/pad into the conv kernel (read native
    # NCTHW blocks + mask boundary taps) to remove this HBM round trip.
    xk = jnp.transpose(x_fast, (0, 2, 1, 3, 4)).reshape(n, t_fast, c_in, hw)
    xk = jnp.pad(xk, ((0, 0), (PAD_T, PAD_T), (0, 0), (0, 0)))

    # Conv weight (C_out, C_in, KT, 1, 1) -> (C_out, KT*C_in), (k, ci) order.
    w2d = jnp.transpose(conv_w[:, :, :, 0, 0], (0, 2, 1)).reshape(c_out, KT * c_in)

    kern = functools.partial(_conv_bnstat_kernel, kt=KT, c_in=c_in,
                             c_out=c_out, hw=hw, alpha=ALPHA, t_out=t_out)
    # TODO(synk): at production SlowFast sizes (HW = 56*56) tile HW into the
    # grid (hw_tile a multiple of 128) so the per-batch block fits v7x/v5e VMEM.
    conv_out, csum, csqsum = pl.pallas_call(
        kern,
        out_shape=(
            jax.ShapeDtypeStruct((n, c_out, t_out * hw), jnp.float32),
            jax.ShapeDtypeStruct((n, c_out, 1), jnp.float32),
            jax.ShapeDtypeStruct((n, c_out, 1), jnp.float32),
        ),
        grid=(n,),
        in_specs=[
            pl.BlockSpec((1, t_pad, c_in, hw), lambda i: (i, 0, 0, 0)),
            pl.BlockSpec((c_out, KT * c_in), lambda i: (0, 0)),
        ],
        out_specs=(
            pl.BlockSpec((1, c_out, t_out * hw), lambda i: (i, 0, 0)),
            pl.BlockSpec((1, c_out, 1), lambda i: (i, 0, 0)),
            pl.BlockSpec((1, c_out, 1), lambda i: (i, 0, 0)),
        ),
        compiler_params=pltpu.CompilerParams(
            dimension_semantics=("parallel",)),
    )(xk, w2d)

    # Training-mode BatchNorm3d: biased batch stats over (N, T, H, W) folded
    # into per-channel scale/shift (only a tiny (N, C_out) reduction in XLA).
    cnt = jnp.float32(n * t_out * hw)
    total = jnp.sum(csum, axis=(0, 2))
    total_sq = jnp.sum(csqsum, axis=(0, 2))
    mean = total / cnt
    var = jnp.maximum(total_sq / cnt - mean * mean, 0.0)   # biased, like torch
    inv_std = bn_gamma / jnp.sqrt(var + BN_EPS)
    scale = inv_std.reshape(c_out, 1)
    shift = (bn_beta - mean * inv_std).reshape(c_out, 1)

    fused = pl.pallas_call(
        _bn_relu_kernel,
        out_shape=jax.ShapeDtypeStruct((n, c_out, t_out * hw), jnp.float32),
        grid=(n,),
        in_specs=[
            pl.BlockSpec((1, c_out, t_out * hw), lambda i: (i, 0, 0)),
            pl.BlockSpec((c_out, 1), lambda i: (0, 0)),
            pl.BlockSpec((c_out, 1), lambda i: (0, 0)),
        ],
        out_specs=pl.BlockSpec((1, c_out, t_out * hw), lambda i: (i, 0, 0)),
        compiler_params=pltpu.CompilerParams(
            dimension_semantics=("parallel",)),
    )(conv_out, scale, shift)

    # (N, C_out, T_out*HW) -> NCTHW is a free split of the last dim.
    fused = fused.reshape(n, c_out, t_out, h, w)
    # TODO(synk): BatchNorm running_mean/running_var buffers are not updated
    # (training-mode forward output only).
    x_slow_new = jnp.concatenate([x_slow, fused], axis=1)
    return [x_slow_new, x_fast]


def _reference(x_slow, x_fast, conv_w, gamma, beta):
    """Pure-JAX reference mirroring the PyTorch forward (training-mode BN)."""
    conv = lax.conv_general_dilated(
        x_fast, conv_w, window_strides=(ALPHA, 1, 1),
        padding=((PAD_T, PAD_T), (0, 0), (0, 0)),
        dimension_numbers=("NCDHW", "OIDHW", "NCDHW"))
    mean = conv.mean(axis=(0, 2, 3, 4), keepdims=True)
    var = conv.var(axis=(0, 2, 3, 4), keepdims=True)
    bn = ((conv - mean) / jnp.sqrt(var + BN_EPS)
          * gamma.reshape(1, -1, 1, 1, 1) + beta.reshape(1, -1, 1, 1, 1))
    fused = jnp.maximum(bn, 0.0)
    return [jnp.concatenate([x_slow, fused], axis=1), x_fast]


if __name__ == "__main__":
    key = jax.random.PRNGKey(0)
    k1, k2, k3, k4, k5 = jax.random.split(key, 5)

    # Small SlowFast-style shapes; H*W chosen as a multiple of 128 so the
    # lane-dense blocks hit unmasked stores even on tiny demo sizes.
    N, C_IN, T_FAST, H, W = 2, 8, 16, 8, 16
    T_SLOW = T_FAST // ALPHA
    C_SLOW = 32
    C_OUT = 2 * C_IN

    x_slow = jax.random.normal(k1, (N, C_SLOW, T_SLOW, H, W), jnp.float32)
    x_fast = jax.random.normal(k2, (N, C_IN, T_FAST, H, W), jnp.float32)
    conv_w = 0.1 * jax.random.normal(k3, (C_OUT, C_IN, KT, 1, 1), jnp.float32)
    bn_gamma = 1.0 + 0.1 * jax.random.normal(k4, (C_OUT,), jnp.float32)
    bn_beta = 0.1 * jax.random.normal(k5, (C_OUT,), jnp.float32)

    fuse_fn = jax.jit(fuse_forward)
    out_slow, out_fast = fuse_fn(x_slow, x_fast, conv_w, bn_gamma, bn_beta)
    jax.block_until_ready(out_slow)
    jax.block_until_ready(out_fast)

    ref_slow, ref_fast = _reference(x_slow, x_fast, conv_w, bn_gamma, bn_beta)
    assert out_slow.shape == (N, C_SLOW + C_OUT, T_SLOW, H, W)
    assert out_fast.shape == x_fast.shape
    assert jnp.allclose(out_slow, ref_slow, atol=2e-3, rtol=2e-3)
    assert jnp.allclose(out_fast, ref_fast)

    print("KERNEL_OK")
</pallas_src>

<mosaic_0001>
module attributes {stable_mosaic.version = 11 : i64} {
  func.func @_conv_bnstat_kernel(%arg0: i32, %arg1: memref<1x20x8x128xf32, #tpu.memory_space<vmem>>, %arg2: memref<16x40xf32, #tpu.memory_space<vmem>>, %arg3: memref<1x16x512xf32, #tpu.memory_space<vmem>>, %arg4: memref<1x16x1xf32, #tpu.memory_space<vmem>>, %arg5: memref<1x16x1xf32, #tpu.memory_space<vmem>>) attributes {dimension_semantics = [#tpu.dimension_semantics<parallel>], iteration_bounds = array<i64: 2>, scalar_prefetch = 0 : i64, scratch_operands = 0 : i64, tpu.core_type = #tpu.core_type<tc>, window_params = [{transform_indices = @transform_0, window_bounds = array<i64: 1, 20, 8, 128>}, {pipeline_mode = #tpu.pipeline_mode<synchronous>, transform_indices = @transform_1, window_bounds = array<i64: 16, 40>}, {transform_indices = @transform_2, window_bounds = array<i64: 1, 16, 512>}, {transform_indices = @transform_3, window_bounds = array<i64: 1, 16, 1>}, {transform_indices = @transform_4, window_bounds = array<i64: 1, 16, 1>}]} {
    %c0 = arith.constant 0 : index
    %c0_0 = arith.constant 0 : index
    %0 = vector.load %arg2[%c0, %c0_0] : memref<16x40xf32, #tpu.memory_space<vmem>>, vector<16x40xf32>
    %cst = arith.constant 0.000000e+00 : f32
    %1 = vector.broadcast %cst : f32 to vector<16x1xf32>
    %cst_1 = arith.constant 0.000000e+00 : f32
    %2 = vector.broadcast %cst_1 : f32 to vector<16x1xf32>
    %c0_2 = arith.constant 0 : index
    %c0_3 = arith.constant 0 : index
    %c0_4 = arith.constant 0 : index
    %c0_5 = arith.constant 0 : index
    %3 = vector.load %arg1[%c0_2, %c0_3, %c0_4, %c0_5] : memref<1x20x8x128xf32, #tpu.memory_space<vmem>>, vector<1x5x8x128xf32>
    %4 = vector.shape_cast %3 : vector<1x5x8x128xf32> to vector<5x8x128xf32>
    %5 = vector.shape_cast %4 : vector<5x8x128xf32> to vector<40x128xf32>
    %cst_6 = arith.constant dense<0.000000e+00> : vector<16x128xf32>
    %6 = tpu.matmul %0, %5, %cst_6 {dimension_numbers = #tpu.dot_dimension_numbers<[1], [0], [0], [1], [0, 0, 1, 1], [], []>} : vector<16x40xf32>, vector<40x128xf32>, vector<16x128xf32> -> vector<16x128xf32>
    %c0_7 = arith.constant 0 : index
    %c0_8 = arith.constant 0 : index
    %c0_9 = arith.constant 0 : index
    %7 = vector.load %arg3[%c0_7, %c0_8, %c0_9] : memref<1x16x512xf32, #tpu.memory_space<vmem>>, vector<1x16x128xf32>
    %8 = vector.shape_cast %7 : vector<1x16x128xf32> to vector<16x128xf32>
    %9 = vector.shape_cast %6 : vector<16x128xf32> to vector<1x16x128xf32>
    tpu.vector_store %arg3[%c0_7, %c0_8, %c0_9], %9 {strides = array<i32>} : memref<1x16x512xf32, #tpu.memory_space<vmem>>, vector<1x16x128xf32>,
    %cst_10 = arith.constant dense<0.000000e+00> : vector<16xf32>
    %10 = vector.multi_reduction <add>, %6, %cst_10 [1] : vector<16x128xf32> to vector<16xf32>
    %11 = vector.shape_cast %10 : vector<16xf32> to vector<16x1xf32>
    %12 = arith.addf %1, %11 : vector<16x1xf32>
    %13 = arith.mulf %6, %6 : vector<16x128xf32>
    %cst_11 = arith.constant dense<0.000000e+00> : vector<16xf32>
    %14 = vector.multi_reduction <add>, %13, %cst_11 [1] : vector<16x128xf32> to vector<16xf32>
    %15 = vector.shape_cast %14 : vector<16xf32> to vector<16x1xf32>
    %16 = arith.addf %2, %15 : vector<16x1xf32>
    %c0_12 = arith.constant 0 : index
    %c4 = arith.constant 4 : index
    %c0_13 = arith.constant 0 : index
    %c0_14 = arith.constant 0 : index
    %17 = vector.load %arg1[%c0_12, %c4, %c0_13, %c0_14] : memref<1x20x8x128xf32, #tpu.memory_space<vmem>>, vector<1x5x8x128xf32>
    %18 = vector.shape_cast %17 : vector<1x5x8x128xf32> to vector<5x8x128xf32>
    %19 = vector.shape_cast %18 : vector<5x8x128xf32> to vector<40x128xf32>
    %cst_15 = arith.constant dense<0.000000e+00> : vector<16x128xf32>
    %20 = tpu.matmul %0, %19, %cst_15 {dimension_numbers = #tpu.dot_dimension_numbers<[1], [0], [0], [1], [0, 0, 1, 1], [], []>} : vector<16x40xf32>, vector<40x128xf32>, vector<16x128xf32> -> vector<16x128xf32>
    %c0_16 = arith.constant 0 : index
    %c0_17 = arith.constant 0 : index
    %c128 = arith.constant 128 : index
    %21 = vector.load %arg3[%c0_16, %c0_17, %c128] : memref<1x16x512xf32, #tpu.memory_space<vmem>>, vector<1x16x128xf32>
    %22 = vector.shape_cast %21 : vector<1x16x128xf32> to vector<16x128xf32>
    %23 = vector.shape_cast %20 : vector<16x128xf32> to vector<1x16x128xf32>
    tpu.vector_store %arg3[%c0_16, %c0_17, %c128], %23 {strides = array<i32>} : memref<1x16x512xf32, #tpu.memory_space<vmem>>, vector<1x16x128xf32>,
    %cst_18 = arith.constant dense<0.000000e+00> : vector<16xf32>
    %24 = vector.multi_reduction <add>, %20, %cst_18 [1] : vector<16x128xf32> to vector<16xf32>
    %25 = vector.shape_cast %24 : vector<16xf32> to vector<16x1xf32>
    %26 = arith.addf %12, %25 : vector<16x1xf32>
    %27 = arith.mulf %20, %20 : vector<16x128xf32>
    %cst_19 = arith.constant dense<0.000000e+00> : vector<16xf32>
    %28 = vector.multi_reduction <add>, %27, %cst_19 [1] : vector<16x128xf32> to vector<16xf32>
    %29 = vector.shape_cast %28 : vector<16xf32> to vector<16x1xf32>
    %30 = arith.addf %16, %29 : vector<16x1xf32>
    %c0_20 = arith.constant 0 : index
    %c8 = arith.constant 8 : index
    %c0_21 = arith.constant 0 : index
    %c0_22 = arith.constant 0 : index
    %31 = vector.load %arg1[%c0_20, %c8, %c0_21, %c0_22] : memref<1x20x8x128xf32, #tpu.memory_space<vmem>>, vector<1x5x8x128xf32>
    %32 = vector.shape_cast %31 : vector<1x5x8x128xf32> to vector<5x8x128xf32>
    %33 = vector.shape_cast %32 : vector<5x8x128xf32> to vector<40x128xf32>
    %cst_23 = arith.constant dense<0.000000e+00> : vector<16x128xf32>
    %34 = tpu.matmul %0, %33, %cst_23 {dimension_numbers = #tpu.dot_dimension_numbers<[1], [0], [0], [1], [0, 0, 1, 1], [], []>} : vector<16x40xf32>, vector<40x128xf32>, vector<16x128xf32> -> vector<16x128xf32>
    %c0_24 = arith.constant 0 : index
    %c0_25 = arith.constant 0 : index
    %c256 = arith.constant 256 : index
    %35 = vector.load %arg3[%c0_24, %c0_25, %c256] : memref<1x16x512xf32, #tpu.memory_space<vmem>>, vector<1x16x128xf32>
    %36 = vector.shape_cast %35 : vector<1x16x128xf32> to vector<16x128xf32>
    %37 = vector.shape_cast %34 : vector<16x128xf32> to vector<1x16x128xf32>
    tpu.vector_store %arg3[%c0_24, %c0_25, %c256], %37 {strides = array<i32>} : memref<1x16x512xf32, #tpu.memory_space<vmem>>, vector<1x16x128xf32>,
    %cst_26 = arith.constant dense<0.000000e+00> : vector<16xf32>
    %38 = vector.multi_reduction <add>, %34, %cst_26 [1] : vector<16x128xf32> to vector<16xf32>
    %39 = vector.shape_cast %38 : vector<16xf32> to vector<16x1xf32>
    %40 = arith.addf %26, %39 : vector<16x1xf32>
    %41 = arith.mulf %34, %34 : vector<16x128xf32>
    %cst_27 = arith.constant dense<0.000000e+00> : vector<16xf32>
    %42 = vector.multi_reduction <add>, %41, %cst_27 [1] : vector<16x128xf32> to vector<16xf32>
    %43 = vector.shape_cast %42 : vector<16xf32> to vector<16x1xf32>
    %44 = arith.addf %30, %43 : vector<16x1xf32>
    %c0_28 = arith.constant 0 : index
    %c12 = arith.constant 12 : index
    %c0_29 = arith.constant 0 : index
    %c0_30 = arith.constant 0 : index
    %45 = vector.load %arg1[%c0_28, %c12, %c0_29, %c0_30] : memref<1x20x8x128xf32, #tpu.memory_space<vmem>>, vector<1x5x8x128xf32>
    %46 = vector.shape_cast %45 : vector<1x5x8x128xf32> to vector<5x8x128xf32>
    %47 = vector.shape_cast %46 : vector<5x8x128xf32> to vector<40x128xf32>
    %cst_31 = arith.constant dense<0.000000e+00> : vector<16x128xf32>
    %48 = tpu.matmul %0, %47, %cst_31 {dimension_numbers = #tpu.dot_dimension_numbers<[1], [0], [0], [1], [0, 0, 1, 1], [], []>} : vector<16x40xf32>, vector<40x128xf32>, vector<16x128xf32> -> vector<16x128xf32>
    %c0_32 = arith.constant 0 : index
    %c0_33 = arith.constant 0 : index
    %c384 = arith.constant 384 : index
    %49 = vector.load %arg3[%c0_32, %c0_33, %c384] : memref<1x16x512xf32, #tpu.memory_space<vmem>>, vector<1x16x128xf32>
    %50 = vector.shape_cast %49 : vector<1x16x128xf32> to vector<16x128xf32>
    %51 = vector.shape_cast %48 : vector<16x128xf32> to vector<1x16x128xf32>
    tpu.vector_store %arg3[%c0_32, %c0_33, %c384], %51 {strides = array<i32>} : memref<1x16x512xf32, #tpu.memory_space<vmem>>, vector<1x16x128xf32>,
    %cst_34 = arith.constant dense<0.000000e+00> : vector<16xf32>
    %52 = vector.multi_reduction <add>, %48, %cst_34 [1] : vector<16x128xf32> to vector<16xf32>
    %53 = vector.shape_cast %52 : vector<16xf32> to vector<16x1xf32>
    %54 = arith.addf %40, %53 : vector<16x1xf32>
    %55 = arith.mulf %48, %48 : vector<16x128xf32>
    %cst_35 = arith.constant dense<0.000000e+00> : vector<16xf32>
    %56 = vector.multi_reduction <add>, %55, %cst_35 [1] : vector<16x128xf32> to vector<16xf32>
    %57 = vector.shape_cast %56 : vector<16xf32> to vector<16x1xf32>
    %58 = arith.addf %44, %57 : vector<16x1xf32>
    %c0_36 = arith.constant 0 : index
    %c0_37 = arith.constant 0 : index
    %c0_38 = arith.constant 0 : index
    %59 = vector.load %arg4[%c0_36, %c0_37, %c0_38] : memref<1x16x1xf32, #tpu.memory_space<vmem>>, vector<1x16x1xf32>
    %60 = vector.shape_cast %59 : vector<1x16x1xf32> to vector<16x1xf32>
    %61 = vector.shape_cast %54 : vector<16x1xf32> to vector<1x16x1xf32>
    tpu.vector_store %arg4[%c0_36, %c0_37, %c0_38], %61 {strides = array<i32>} : memref<1x16x1xf32, #tpu.memory_space<vmem>>, vector<1x16x1xf32>,
    %c0_39 = arith.constant 0 : index
    %c0_40 = arith.constant 0 : index
    %c0_41 = arith.constant 0 : index
    %62 = vector.load %arg5[%c0_39, %c0_40, %c0_41] : memref<1x16x1xf32, #tpu.memory_space<vmem>>, vector<1x16x1xf32>
    %63 = vector.shape_cast %62 : vector<1x16x1xf32> to vector<16x1xf32>
    %64 = vector.shape_cast %58 : vector<16x1xf32> to vector<1x16x1xf32>
    tpu.vector_store %arg5[%c0_39, %c0_40, %c0_41], %64 {strides = array<i32>} : memref<1x16x1xf32, #tpu.memory_space<vmem>>, vector<1x16x1xf32>,
    return
  }
  func.func @transform_0(%arg0: i32) -> (i32, i32, i32, i32) {
    %c0_i32 = arith.constant 0 : i32
    %c0_i32_0 = arith.constant 0 : i32
    %c0_i32_1 = arith.constant 0 : i32
    %c0_i32_2 = arith.constant 0 : i32
    return %arg0, %c0_i32, %c0_i32_0, %c0_i32_1 : i32, i32, i32, i32
  }
  func.func @transform_1(%arg0: i32) -> (i32, i32) {
    %c0_i32 = arith.constant 0 : i32
    %c0_i32_0 = arith.constant 0 : i32
    %c0_i32_1 = arith.constant 0 : i32
    return %c0_i32, %c0_i32_0 : i32, i32
  }
  func.func @transform_2(%arg0: i32) -> (i32, i32, i32) {
    %c0_i32 = arith.constant 0 : i32
    %c0_i32_0 = arith.constant 0 : i32
    %c0_i32_1 = arith.constant 0 : i32
    return %arg0, %c0_i32, %c0_i32_0 : i32, i32, i32
  }
  func.func @transform_3(%arg0: i32) -> (i32, i32, i32) {
    %c0_i32 = arith.constant 0 : i32
    %c0_i32_0 = arith.constant 0 : i32
    %c0_i32_1 = arith.constant 0 : i32
    return %arg0, %c0_i32, %c0_i32_0 : i32, i32, i32
  }
  func.func @transform_4(%arg0: i32) -> (i32, i32, i32) {
    %c0_i32 = arith.constant 0 : i32
    %c0_i32_0 = arith.constant 0 : i32
    %c0_i32_1 = arith.constant 0 : i32
    return %arg0, %c0_i32, %c0_i32_0 : i32, i32, i32
  }
}

module attributes {stable_mosaic.version = 11 : i64} {
  func.func @_bn_relu_kernel(%arg0: i32, %arg1: memref<1x16x512xf32, #tpu.memory_space<vmem>>, %arg2: memref<16x1xf32, #tpu.memory_space<vmem>>, %arg3: memref<16x1xf32, #tpu.memory_space<vmem>>, %arg4: memref<1x16x512xf32, #tpu.memory_space<vmem>>) attributes {dimension_semantics = [#tpu.dimension_semantics<parallel>], iteration_bounds = array<i64: 2>, scalar_prefetch = 0 : i64, scratch_operands = 0 : i64, tpu.core_type = #tpu.core_type<tc>, window_params = [{transform_indices = @transform_0, window_bounds = array<i64: 1, 16, 512>}, {pipeline_mode = #tpu.pipeline_mode<synchronous>, transform_indices = @transform_1, window_bounds = array<i64: 16, 1>}, {pipeline_mode = #tpu.pipeline_mode<synchronous>, transform_indices = @transform_2, window_bounds = array<i64: 16, 1>}, {transform_indices = @transform_3, window_bounds = array<i64: 1, 16, 512>}]} {
    %c0 = arith.constant 0 : index
    %c0_0 = arith.constant 0 : index
    %c0_1 = arith.constant 0 : index
    %0 = vector.load %arg1[%c0, %c0_0, %c0_1] : memref<1x16x512xf32, #tpu.memory_space<vmem>>, vector<1x16x512xf32>
    %1 = vector.shape_cast %0 : vector<1x16x512xf32> to vector<16x512xf32>
    %c0_2 = arith.constant 0 : index
    %c0_3 = arith.constant 0 : index
    %2 = vector.load %arg2[%c0_2, %c0_3] : memref<16x1xf32, #tpu.memory_space<vmem>>, vector<16x1xf32>
    %3 = vector.broadcast %2 : vector<16x1xf32> to vector<16x512xf32>
    %4 = arith.mulf %1, %3 : vector<16x512xf32>
    %c0_4 = arith.constant 0 : index
    %c0_5 = arith.constant 0 : index
    %5 = vector.load %arg3[%c0_4, %c0_5] : memref<16x1xf32, #tpu.memory_space<vmem>>, vector<16x1xf32>
    %6 = vector.broadcast %5 : vector<16x1xf32> to vector<16x512xf32>
    %7 = arith.addf %4, %6 : vector<16x512xf32>
    %cst = arith.constant 0.000000e+00 : f32
    %8 = vector.broadcast %cst : f32 to vector<16x512xf32>
    %9 = arith.maximumf %7, %8 : vector<16x512xf32>
    %c0_6 = arith.constant 0 : index
    %c0_7 = arith.constant 0 : index
    %c0_8 = arith.constant 0 : index
    %10 = vector.load %arg4[%c0_6, %c0_7, %c0_8] : memref<1x16x512xf32, #tpu.memory_space<vmem>>, vector<1x16x512xf32>
    %11 = vector.shape_cast %10 : vector<1x16x512xf32> to vector<16x512xf32>
    %12 = vector.shape_cast %9 : vector<16x512xf32> to vector<1x16x512xf32>
    tpu.vector_store %arg4[%c0_6, %c0_7, %c0_8], %12 {strides = array<i32>} : memref<1x16x512xf32, #tpu.memory_space<vmem>>, vector<1x16x512xf32>,
    return
  }
  func.func @transform_0(%arg0: i32) -> (i32, i32, i32) {
    %c0_i32 = arith.constant 0 : i32
    %c0_i32_0 = arith.constant 0 : i32
    %c0_i32_1 = arith.constant 0 : i32
    return %arg0, %c0_i32, %c0_i32_0 : i32, i32, i32
  }
  func.func @transform_1(%arg0: i32) -> (i32, i32) {
    %c0_i32 = arith.constant 0 : i32
    %c0_i32_0 = arith.constant 0 : i32
    %c0_i32_1 = arith.constant 0 : i32
    return %c0_i32, %c0_i32_0 : i32, i32
  }
  func.func @transform_2(%arg0: i32) -> (i32, i32) {
    %c0_i32 = arith.constant 0 : i32
    %c0_i32_0 = arith.constant 0 : i32
    %c0_i32_1 = arith.constant 0 : i32
    return %c0_i32, %c0_i32_0 : i32, i32
  }
  func.func @transform_3(%arg0: i32) -> (i32, i32, i32) {
    %c0_i32 = arith.constant 0 : i32
    %c0_i32_0 = arith.constant 0 : i32
    %c0_i32_1 = arith.constant 0 : i32
    return %arg0, %c0_i32, %c0_i32_0 : i32, i32, i32
  }
}

</mosaic_0001>

<bundles_post_ra>
// kernel: fuse_forward.3
= control target key start
LH: loop header
LB: loop body
LE: loop exit
PB: predicated region body
PF: predicated region fallthrough
CT: control target
= control target key end

     0   :  { %s343_s12 = smov 0   ;;  %s372_s0 = inlined_call_operand.vmem [shape: f32[2,16,512], index: 0, kind: input, shape index: {}]   ;;  %s373_s1 = inlined_call_operand.vmem [shape: f32[16,1], index: 1, kind: input, shape index: {}]   ;;  %s374_s2 = inlined_call_operand.vmem [shape: f32[16,1], index: 2, kind: input, shape index: {}]   ;;  %s375_s3 = inlined_call_operand.vmem [shape: f32[2,16,512], index: 3, kind: output, shape index: {}]  }
   0x1 LB: > { %s290_s13 = sadd.s32 4294967295, %s320_s12   ;;  %p294_p0 = scmp.ge.s32.totalorder %s320_s12, 1  ;;  %s320_s12 = sphi %s343_s12, %s13_s12  }
   0x2   : > { %p137_p1 = scmp.lt.s32.totalorder %s320_s12, 3 }
   0x4   : > { %p138_p2 = pnand %p294_p0, %p137_p1 }
   0x5   : > { %v199_v0 = vld [vmem:[%s374_s2] sm:$0xff] (!%p138_p2)  ;;  %v322_v2 = vmov (!%p138_p2), 0   ;;  %v200_v3 = vld [vmem:[%s374_s2 + $0x8] sm:$0xff] (!%p138_p2)  ;;  %p161_p3 = scmp.lt.s32.totalorder (!%p138_p2), %s290_s13, 1 }
   0x6   : > { %141 = sbr.rel (%p138_p2) target bundleno = 148 (0x94), region = 32  ;;  %v179_v1 = vld [vmem:[%s373_s1] sm:$0xff] (!%p138_p2)  ;;  %313 = vset.pattern.permute.xlu1 (!%p138_p2), %v322_v2  ;;  %312 = vset.pattern.permute.xlu0 (!%p138_p2), %v322_v2  ;;  %v180_v4 = vld [vmem:[%s373_s1 + $0x8] sm:$0xff] (!%p138_p2) }
   0x7   : > { %203 = vperm.xlu1 (!%p138_p2), %313, %v199_v0   ;;  %183 = vperm.xlu0 (!%p138_p2), %312, %v179_v1  }
   0xb   : > { %208 = vperm.xlu1 (!%p138_p2), %313, %v200_v3   ;;  %188 = vperm.xlu0 (!%p138_p2), %312, %v180_v4  }
   0xd   : > { %s377_s13 = smov (!%p161_p3, %s290_s13), 1 }
   0xe   : > { %s301_s22 = sshll.u32 %s377_s13, 6 }
   0xf   : > { %s165_s25 = scalar_lea.vmem %s372_s0, %s301_s22  ;;  %s170_s28 = scalar_lea.vmem %s375_s3, %s301_s22 }
  0x10   : > { %v171_v5 = vld [vmem:[%s165_s25] sm:$0xff]  ;;  %v172_v6 = vld [vmem:[%s165_s25 + $0x8] sm:$0xff]  ;;  %v173_v7 = vld [vmem:[%s165_s25 + $0x10] sm:$0xff] }
  0x11   : > { %v174_v8 = vld [vmem:[%s165_s25 + $0x18] sm:$0xff]  ;;  %v175_v15 = vld [vmem:[%s165_s25 + $0x20] sm:$0xff]  ;;  %v176_v20 = vld [vmem:[%s165_s25 + $0x28] sm:$0xff] }
  0x12   : > { %v177_v21 = vld [vmem:[%s165_s25 + $0x30] sm:$0xff]  ;;  %v178_v22 = vld [vmem:[%s165_s25 + $0x38] sm:$0xff] }
  0x86   : > { %v184_v9 = vpop.permute.xlu0 %183  ;;  %v204_v10 = vpop.permute.xlu1 %203 }
  0x87   : > { %v191_v11 = vmul.f32 %v184_v9, %v171_v5  ;;  %v192_v12 = vmul.f32 %v184_v9, %v172_v6  ;;  %v193_v13 = vmul.f32 %v184_v9, %v173_v7  ;;  %v194_v14 = vmul.f32 %v184_v9, %v174_v8 }
  0x89   : > { %v211_v16 = vadd.f32 %v204_v10, %v191_v11  ;;  %v212_v17 = vadd.f32 %v204_v10, %v192_v12  ;;  %v213_v18 = vadd.f32 %v204_v10, %v193_v13  ;;  %v214_v19 = vadd.f32 %v204_v10, %v194_v14 }
  0x8a   : > { %v189_v23 = vpop.permute.xlu0 %188  ;;  %v209_v32 = vpop.permute.xlu1 %208 }
  0x8b   : > { %v219_v24 = vmax.f32 %v211_v16, 0.0  ;;  %v220_v25 = vmax.f32 %v212_v17, 0.0  ;;  %v221_v26 = vmax.f32 %v213_v18, 0.0  ;;  %v222_v27 = vmax.f32 %v214_v19, 0.0 }
  0x8c   : > { %v195_v28 = vmul.f32 %v189_v23, %v175_v15  ;;  %v196_v29 = vmul.f32 %v189_v23, %v176_v20  ;;  %v197_v30 = vmul.f32 %v189_v23, %v177_v21  ;;  %v198_v31 = vmul.f32 %v189_v23, %v178_v22 }
  0x8d   : > { %227 = vst [vmem:[%s170_s28] sm:$0xff] %v219_v24  ;;  %228 = vst [vmem:[%s170_s28 + $0x8] sm:$0xff] %v220_v25 }
  0x8e   : > { %229 = vst [vmem:[%s170_s28 + $0x10] sm:$0xff] %v221_v26  ;;  %230 = vst [vmem:[%s170_s28 + $0x18] sm:$0xff] %v222_v27  ;;  %v215_v33 = vadd.f32 %v209_v32, %v195_v28  ;;  %v216_v34 = vadd.f32 %v209_v32, %v196_v29  ;;  %v217_v35 = vadd.f32 %v209_v32, %v197_v30 }
  0x8f   : > { %v218_v36 = vadd.f32 %v209_v32, %v198_v31 }
  0x90   : > { %v223_v37 = vmax.f32 %v215_v33, 0.0  ;;  %v224_v38 = vmax.f32 %v216_v34, 0.0  ;;  %v225_v39 = vmax.f32 %v217_v35, 0.0 }
  0x91   : > { %v226_v40 = vmax.f32 %v218_v36, 0.0 }
  0x92   : > { %231 = vst [vmem:[%s170_s28 + $0x20] sm:$0xff] %v223_v37  ;;  %232 = vst [vmem:[%s170_s28 + $0x28] sm:$0xff] %v224_v38 }
  0x93   : > { %233 = vst [vmem:[%s170_s28 + $0x30] sm:$0xff] %v225_v39  ;;  %234 = vst [vmem:[%s170_s28 + $0x38] sm:$0xff] %v226_v40 }
  0x94 PF: > { %s13_s12 = sadd.s32 1, %s320_s12  }
  0x95   : > { %p10_p4 = scmp.ge.s32.totalorder %s13_s12, 4  }
  0x97   :  { %12 = sbr.rel (!%p10_p4) target bundleno = 1 (0x1), region = 62 }

// kernel: fuse_forward.2
= control target key start
LH: loop header
LB: loop body
LE: loop exit
PB: predicated region body
PF: predicated region fallthrough
CT: control target
= control target key end

     0   :  { %s939_s15 = smov 0   ;;  %s1004_s0 = inlined_call_operand.vmem [shape: f32[2,20,8,128], index: 0, kind: input, shape index: {}]   ;;  %s1005_s1 = inlined_call_operand.vmem [shape: f32[16,40], index: 1, kind: input, shape index: {}]   ;;  %s1006_s2 = inlined_call_operand.vmem [shape: f32[2,16,512], index: 2, kind: output, shape index: {0}]   ;;  %s1007_s3 = inlined_call_operand.vmem [shape: f32[2,16,1], index: 3, kind: output, shape index: {1}]   ;;  %s1008_s4 = inlined_call_operand.vmem [shape: f32[2,16,1], index: 4, kind: output, shape index: {2}]  }
   0x1 LB: > { %s745_s16 = sadd.s32 4294967295, %s912_s15   ;;  %p749_p0 = scmp.ge.s32.totalorder %s912_s15, 1  ;;  %s912_s15 = sphi %s939_s15, %s15_s15  }
   0x2   : > { %p167_p1 = scmp.lt.s32.totalorder %s912_s15, 3 }
   0x4   : > { %p168_p2 = pnand %p749_p0, %p167_p1 }
   0x5   : > { %p203_p3 = scmp.lt.s32.totalorder (!%p168_p2), %s745_s16, 1  ;;  %v223_v0 = vld [vmem:[%s1005_s1] sm:$0xff] (!%p168_p2)  ;;  %vm230_vm0 = vcmask (!%p168_p2), 326656   ;;  %v224_v19 = vld [vmem:[%s1005_s1 + $0x8] sm:$0xff] (!%p168_p2)  ;;  %vm619_vm1 = vcmask (!%p168_p2), 7168  }
   0x6   : > { %171 = sbr.rel (%p168_p2) target bundleno = 416 (0x1a0), region = 28  ;;  %823 = vmatprep.mubr.msk.f32.mxu0 (!%p168_p2), %vm230_vm0, %v223_v0  ;;  %836 = vmatprep.mubr.msk.f32.mxu1 (!%p168_p2), %vm230_vm0, %v223_v0 }
   0xd   : > { %s1010_s16 = smov (!%p203_p3, %s745_s16), 1 }
   0xe   : > { %s897_s19 = smul.u32 160, %s1010_s16  ;;  %s782_s25 = sshll.u32 %s1010_s16, 6 }
   0xf   : > { %s212_s28 = scalar_lea.vmem %s1006_s2, %s782_s25  ;;  %s783_s29 = sshll.u32 %s1010_s16, 4 }
  0x10   : > { %s958_s22 = scalar_lea.vmem %s1004_s0, %s897_s19  ;;  %s217_s6 = scalar_lea.vmem %s1007_s3, %s783_s29 }
  0x11   : > { %v225_v1 = vld [vmem:[%s958_s22] sm:$0xff]  ;;  %v226_v2 = vld [vmem:[%s958_s22 + $0x8] sm:$0xff]  ;;  %v227_v6 = vld [vmem:[%s958_s22 + $0x10] sm:$0xff]  ;;  %s222_s9 = scalar_lea.vmem %s1008_s4, %s783_s29 }
  0x12   : > { %v759_v3 = vld [vmem:[%s958_s22 + $0x20] sm:$0xff]  ;;  %v865_v4 = vpack.c.bf16 %v226_v2, %v225_v1  ;;  %v760_v5 = vld [vmem:[%s958_s22 + $0x28] sm:$0xff]  ;;  %v228_v7 = vld [vmem:[%s958_s22 + $0x18] sm:$0xff] }
  0x13   : > { %v873_v8 = vpack.c.bf16 %v760_v5, %v759_v3  ;;  %v869_v9 = vpack.c.bf16 %v228_v7, %v227_v6  ;;  %v761_v10 = vld [vmem:[%s958_s22 + $0x30] sm:$0xff]  ;;  %v762_v11 = vld [vmem:[%s958_s22 + $0x38] sm:$0xff]  ;;  %v763_v13 = vld [vmem:[%s958_s22 + $0x40] sm:$0xff] }
  0x14   : > { %866 = vmatprep.subr.bf16.mxu0 %v865_v4  ;;  %v877_v12 = vpack.c.bf16 %v762_v11, %v761_v10  ;;  %v767_v14 = vld [vmem:[%s958_s22 + $0x48] sm:$0xff]  ;;  %v773_v15 = vld [vmem:[%s958_s22 + $0x60] sm:$0xff]  ;;  %v768_v17 = vld [vmem:[%s958_s22 + $0x50] sm:$0xff] }
  0x15   : > { %874 = vmatprep.subr.bf16.mxu1 %v873_v8  ;;  %868 = vmatpush3.bf16.msra.mxu0 %v865_v4  ;;  %v774_v16 = vld [vmem:[%s958_s22 + $0x68] sm:$0xff]  ;;  %v769_v18 = vld [vmem:[%s958_s22 + $0x58] sm:$0xff]  ;;  %v881_v20 = vpack.c.bf16 %v767_v14, %v763_v13  ;;  %v775_v21 = vld [vmem:[%s958_s22 + $0x70] sm:$0xff] }
  0x16   : > { %876 = vmatpush3.bf16.msra.mxu1 %v873_v8  ;;  %870 = vmatprep.subr.bf16.mxu0 %v869_v9  ;;  %v776_v22 = vld [vmem:[%s958_s22 + $0x78] sm:$0xff]  ;;  %v889_v23 = vpack.c.bf16 %v774_v16, %v773_v15  ;;  %v885_v24 = vpack.c.bf16 %v769_v18, %v768_v17  ;;  %v777_v26 = vld [vmem:[%s958_s22 + $0x80] sm:$0xff] }
  0x17   : > { %878 = vmatprep.subr.bf16.mxu1 %v877_v12  ;;  %v893_v25 = vpack.c.bf16 %v776_v22, %v775_v21 }
  0x19   : > { %872 = vmatpush3.bf16.msra.mxu0 %v869_v9 }
  0x1a   : > { %880 = vmatpush3.bf16.msra.mxu1 %v877_v12  ;;  %821 = vmatprep.subr.mxu0 %v759_v3 }
  0x1b   : > { %834 = vmatprep.subr.mxu1 %v763_v13 }
  0x1d   : > { %822 = vmatpush3.msra.mxu0 %v759_v3 }
  0x1e   : > { %835 = vmatpush3.msra.mxu1 %v763_v13  ;;  %824 = vmatmul.mubr.msk.f32.vlgmr.msra.gmra.mrb[0].mxu0 %vm230_vm0, %v224_v19 }
  0x1f   : > { %837 = vmatmul.mubr.msk.f32.vlgmr.msra.gmra.mrb[0].mxu1 %vm230_vm0, %v224_v19  ;;  %882 = vmatprep.subr.bf16.mxu0 %v881_v20 }
  0x20   : > { %884 = vmatpush3.bf16.msra.mxu0 %v881_v20  ;;  %890 = vmatprep.subr.bf16.mxu1 %v889_v23 }
  0x21   : > { %886 = vmatprep.subr.bf16.mxu0 %v885_v24  ;;  %892 = vmatpush3.bf16.msra.mxu1 %v889_v23 }
  0x22   : > { %894 = vmatprep.subr.bf16.mxu1 %v893_v25  ;;  %849 = vmatprep.mubr.msk.f32.mxu0 %vm230_vm0, %v223_v0 }
  0x23   : > { %862 = vmatprep.mubr.msk.f32.mxu1 %vm230_vm0, %v223_v0 }
  0x24   : > { %888 = vmatpush3.bf16.msra.mxu0 %v885_v24 }
  0x25   : > { %847 = vmatprep.subr.mxu0 %v773_v15  ;;  %896 = vmatpush3.bf16.msra.mxu1 %v893_v25 }
  0x26   : > { %860 = vmatprep.subr.mxu1 %v777_v26 }
  0x28   : > { %848 = vmatpush3.msra.mxu0 %v773_v15 }
  0x29   : > { %850 = vmatmul.mubr.msk.f32.vlgmr.msra.gmra.mrb[2].mxu0 %vm230_vm0, %v224_v19  ;;  %861 = vmatpush3.msra.mxu1 %v777_v26 }
  0x2a   : > { %863 = vmatmul.mubr.msk.f32.vlgmr.msra.gmra.mrb[2].mxu1 %vm230_vm0, %v224_v19 }
  0xf1   : > { %v825_v27 = vpop.f32.mrb[0].mxu0 }
  0xf2   : > { %313 = vst [vmem:[%s212_s28 + $0x20] sm:$0xff] %v825_v27  ;;  %v838_v28 = vpop.f32.mrb[0].mxu1  ;;  %316 = vadd.xlane.f32.xlu0 %v825_v27  ;;  %v303_v29 = vpop.f32.mrb[1].mxu0  ;;  %v321_v31 = vmul.f32 %v825_v27, %v825_v27 }
  0xf3   : > { %410 = vst [vmem:[%s212_s28 + $0x28] sm:$0xff] %v838_v28  ;;  %413 = vadd.xlane.f32.xlu1 %v838_v28  ;;  %v400_v30 = vpop.f32.mrb[1].mxu1  ;;  %312 = vst [vmem:[%s212_s28] sm:$0xff] %v303_v29  ;;  %v418_v32 = vmul.f32 %v838_v28, %v838_v28  ;;  %v320_v35 = vmul.f32 %v303_v29, %v303_v29 }
  0xf4   : > { %409 = vst [vmem:[%s212_s28 + $0x8] sm:$0xff] %v400_v30  ;;  %v417_v33 = vmul.f32 %v400_v30, %v400_v30 }
  0xf6   : > { %314 = vadd.xlane.f32.xlu0 %v303_v29 }
  0xf7   : > { %324 = vadd.xlane.f32.xlu1 %v321_v31 }
  0xfa   : > { %411 = vadd.xlane.f32.xlu0 %v400_v30 }
  0xfb   : > { %421 = vadd.xlane.f32.xlu1 %v418_v32 }
  0xfc   : > { %v851_v34 = vpop.f32.mrb[2].mxu0 }
  0xfd   : > { %507 = vst [vmem:[%s212_s28 + $0x30] sm:$0xff] %v851_v34  ;;  %v497_v36 = vpop.f32.mrb[3].mxu0  ;;  %v864_v37 = vpop.f32.mrb[2].mxu1  ;;  %v515_v40 = vmul.f32 %v851_v34, %v851_v34 }
  0xfe   : > { %419 = vadd.xlane.f32.xlu0 %v417_v33  ;;  %506 = vst [vmem:[%s212_s28 + $0x10] sm:$0xff] %v497_v36  ;;  %604 = vst [vmem:[%s212_s28 + $0x38] sm:$0xff] %v864_v37  ;;  %v594_v38 = vpop.f32.mrb[3].mxu1  ;;  %v514_v39 = vmul.f32 %v497_v36, %v497_v36  ;;  %v612_v42 = vmul.f32 %v864_v37, %v864_v37 }
  0xff   : > { %322 = vadd.xlane.f32.xlu1 %v320_v35  ;;  %603 = vst [vmem:[%s212_s28 + $0x18] sm:$0xff] %v594_v38  ;;  %v611_v41 = vmul.f32 %v594_v38, %v594_v38 }
 0x102   : > { %508 = vadd.xlane.f32.xlu0 %v497_v36 }
 0x103   : > { %510 = vadd.xlane.f32.xlu1 %v851_v34 }
 0x106   : > { %605 = vadd.xlane.f32.xlu0 %v594_v38 }
 0x107   : > { %607 = vadd.xlane.f32.xlu1 %v864_v37 }
 0x10a   : > { %516 = vadd.xlane.f32.xlu0 %v514_v39 }
 0x10b   : > { %518 = vadd.xlane.f32.xlu1 %v515_v40 }
 0x10e   : > { %613 = vadd.xlane.f32.xlu0 %v611_v41 }
 0x10f   : > { %615 = vadd.xlane.f32.xlu1 %v612_v42 }
 0x17f   : > { %v317_v43 = vpop.xlane.xlu0 %316 }
 0x180   : > { %v414_v44 = vpop.xlane.xlu1 %413 }
 0x181   : > { %v416_v54 = vadd.f32 %v414_v44, %v317_v43 }
 0x183   : > { %v315_v45 = vpop.xlane.xlu0 %314 }
 0x184   : > { %v325_v46 = vpop.xlane.xlu1 %324 }
 0x187   : > { %v412_v47 = vpop.xlane.xlu0 %411 }
 0x188   : > { %v422_v48 = vpop.xlane.xlu1 %421  ;;  %v415_v52 = vadd.f32 %v412_v47, %v315_v45 }
 0x189   : > { %v424_v0 = vadd.f32 %v422_v48, %v325_v46 }
 0x18b   : > { %v420_v49 = vpop.xlane.xlu0 %419 }
 0x18c   : > { %v323_v50 = vpop.xlane.xlu1 %322 }
 0x18d   : > { %v423_v62 = vadd.f32 %v420_v49, %v323_v50 }
 0x18f   : > { %v509_v51 = vpop.xlane.xlu0 %508 }
 0x190   : > { %v511_v53 = vpop.xlane.xlu1 %510  ;;  %v512_v55 = vadd.f32 %v509_v51, %v415_v52 }
 0x191   : > { %v513_v56 = vadd.f32 %v511_v53, %v416_v54 }
 0x193   : > { %v606_v57 = vpop.xlane.xlu0 %605 }
 0x194   : > { %v609_v58 = vadd.f32 %v606_v57, %v512_v55  ;;  %v608_v59 = vpop.xlane.xlu1 %607 }
 0x195   : > { %v610_v60 = vadd.f32 %v608_v59, %v513_v56 }
 0x196   : > { %620 = vst.msk [vmem:[%s217_s6] sm:$0xff] %vm619_vm1, %v609_v58 }
 0x197   : > { %621 = vst.msk [vmem:[%s217_s6 + $0x8] sm:$0xff] %vm619_vm1, %v610_v60  ;;  %v517_v61 = vpop.xlane.xlu0 %516 }
 0x198   : > { %v519_v63 = vpop.xlane.xlu1 %518  ;;  %v520_v1 = vadd.f32 %v517_v61, %v423_v62 }
 0x199   : > { %v521_v2 = vadd.f32 %v519_v63, %v424_v0 }
 0x19b   : > { %v614_v3 = vpop.xlane.xlu0 %613 }
 0x19c   : > { %v617_v4 = vadd.f32 %v614_v3, %v520_v1  ;;  %v616_v5 = vpop.xlane.xlu1 %615 }
 0x19d   : > { %v618_v6 = vadd.f32 %v616_v5, %v521_v2 }
 0x19e   : > { %622 = vst.msk [vmem:[%s222_s9] sm:$0xff] %vm619_vm1, %v617_v4 }
 0x19f   : > { %623 = vst.msk [vmem:[%s222_s9 + $0x8] sm:$0xff] %vm619_vm1, %v618_v6 }
 0x1a0 PF: > { %s15_s15 = sadd.s32 1, %s912_s15  }
 0x1a1   : > { %p12_p4 = scmp.ge.s32.totalorder %s15_s15, 4  }
 0x1a3   :  { %14 = sbr.rel (!%p12_p4) target bundleno = 1 (0x1), region = 85 }

</bundles_post_ra>
